<compile_context>
chip_gen: v7x
topology: tpu7x:2x2x1
jax: 0.10.0
libtpu: 0.0.40
codegen_flags: <defaults>
</compile_context>

<pallas_src>
import jax
import jax.numpy as jnp
from jax.experimental import pallas as pl
from jax.experimental.pallas import tpu as pltpu

LN_EPS = 1e-5
SUBLANE = 8


def _round_up(x, m):
    return (x + m - 1) // m * m


def _similarity_kernel(x_ref, w_ref, b_ref, g_ref, beta_ref, o_ref):
    # Linear (f32 MXU, f32 accumulation) + bias + ReLU.
    h = jnp.dot(x_ref[...], w_ref[...], preferred_element_type=jnp.float32)
    h = jnp.maximum(h + b_ref[...], 0.0)

    # LayerNorm over the full (unpadded) feature dim; biased variance like torch.
    mean = jnp.mean(h, axis=-1, keepdims=True)
    cent = h - mean
    var = jnp.mean(cent * cent, axis=-1, keepdims=True)
    hn = cent * jax.lax.rsqrt(var + LN_EPS) * g_ref[...] + beta_ref[...]

    # Final ReLU.
    o_ref[...] = jnp.maximum(hn, 0.0).astype(o_ref.dtype)


def similarity_layer(x, params, *, batch_tile=1024):
    """x: [N, R] float32. params: 'w' [R, R] (in x out), 'b'/'gamma'/'beta' [1, R]."""
    n, r = x.shape

    # Row tile: multiple of 8 sublanes, never bigger than the (rounded) batch,
    # and split so that batches fitting a single tile still give >= 2 grid
    # steps (so both v7x TensorCores get work). Ragged last block is clipped.
    batch_tile = min(batch_tile, _round_up(n, SUBLANE))
    if -(-n // batch_tile) < 2 and n > SUBLANE:
        batch_tile = _round_up(-(-n // 2), SUBLANE)
    batch_tile = max(SUBLANE, _round_up(batch_tile, SUBLANE))
    grid = (pl.cdiv(n, batch_tile),)

    w, b, g, beta = params["w"], params["b"], params["gamma"], params["beta"]

    const = lambda shape: pl.BlockSpec(shape, lambda i: (0, 0))
    itemsize = jnp.dtype(x.dtype).itemsize
    cost = pl.CostEstimate(
        flops=2 * n * r * r,
        transcendentals=n,                      # one rsqrt per row
        bytes_accessed=(n * r * itemsize        # x in
                        + n * r * itemsize      # y out
                        + r * r * 4             # w
                        + 3 * r * 4),           # b, gamma, beta
    )

    return pl.pallas_call(
        _similarity_kernel,
        out_shape=jax.ShapeDtypeStruct((n, r), x.dtype),
        grid_spec=pltpu.PrefetchScalarGridSpec(
            num_scalar_prefetch=0,
            grid=grid,
            in_specs=[
                pl.BlockSpec((batch_tile, r), lambda i: (i, 0)),  # x tile
                const((r, r)),                                    # w  (resident)
                const((1, r)),                                    # b
                const((1, r)),                                    # gamma
                const((1, r)),                                    # beta
            ],
            out_specs=pl.BlockSpec((batch_tile, r), lambda i: (i, 0)),
        ),
        compiler_params=pltpu.CompilerParams(
            dimension_semantics=("parallel",)),
        cost_estimate=cost,
    )(x, w, b, g, beta)


def init_params(key, retrieval_number):
    """PyTorch-default-style init. Weight stored [in, out] (transposed vs torch)."""
    kw, kb = jax.random.split(key)
    bound = 1.0 / (retrieval_number ** 0.5)
    w = jax.random.uniform(kw, (retrieval_number, retrieval_number),
                           jnp.float32, -bound, bound)
    b = jax.random.uniform(kb, (1, retrieval_number), jnp.float32, -bound, bound)
    return {
        "w": w, "b": b,
        "gamma": jnp.ones((1, retrieval_number), jnp.float32),   # LayerNorm weight
        "beta": jnp.zeros((1, retrieval_number), jnp.float32),   # LayerNorm bias
    }


def _reference(x, p):
    # Same math as the PyTorch module, pure f32.
    h = jnp.dot(x, p["w"], preferred_element_type=jnp.float32) + p["b"]
    h = jnp.maximum(h, 0.0)
    mean = jnp.mean(h, axis=-1, keepdims=True)
    var = jnp.mean((h - mean) ** 2, axis=-1, keepdims=True)
    hn = (h - mean) / jnp.sqrt(var + LN_EPS) * p["gamma"] + p["beta"]
    return jnp.maximum(hn, 0.0)


if __name__ == "__main__":
    retrieval_number = 8
    batch = 300          # ragged batch: exercises clipped last block + 2-step grid

    key = jax.random.PRNGKey(0)
    kx, kp = jax.random.split(key)
    x = jax.random.normal(kx, (batch, retrieval_number), jnp.float32)
    params = init_params(kp, retrieval_number)

    out = jax.block_until_ready(similarity_layer(x, params))

    ref = _reference(x, params)
    assert out.shape == (batch, retrieval_number)
    assert jnp.allclose(out, ref, atol=1e-3, rtol=1e-3), "mismatch vs reference"

    print("KERNEL_OK")
</pallas_src>

<mosaic_0001>
module attributes {stable_mosaic.version = 11 : i64} {
  func.func @_similarity_kernel(%arg0: i32, %arg1: memref<152x8xf32, #tpu.memory_space<vmem>>, %arg2: memref<8x8xf32, #tpu.memory_space<vmem>>, %arg3: memref<1x8xf32, #tpu.memory_space<vmem>>, %arg4: memref<1x8xf32, #tpu.memory_space<vmem>>, %arg5: memref<1x8xf32, #tpu.memory_space<vmem>>, %arg6: memref<152x8xf32, #tpu.memory_space<vmem>>) attributes {dimension_semantics = [#tpu.dimension_semantics<parallel>], iteration_bounds = array<i64: 2>, scalar_prefetch = 0 : i64, scratch_operands = 0 : i64, tpu.core_type = #tpu.core_type<tc>, window_params = [{transform_indices = @transform_0, window_bounds = array<i64: 152, 8>}, {pipeline_mode = #tpu.pipeline_mode<synchronous>, transform_indices = @transform_1, window_bounds = array<i64: 8, 8>}, {pipeline_mode = #tpu.pipeline_mode<synchronous>, transform_indices = @transform_2, window_bounds = array<i64: 1, 8>}, {pipeline_mode = #tpu.pipeline_mode<synchronous>, transform_indices = @transform_3, window_bounds = array<i64: 1, 8>}, {pipeline_mode = #tpu.pipeline_mode<synchronous>, transform_indices = @transform_4, window_bounds = array<i64: 1, 8>}, {transform_indices = @transform_5, window_bounds = array<i64: 152, 8>}]} {
    %c0 = arith.constant 0 : index
    %c0_0 = arith.constant 0 : index
    %0 = vector.load %arg1[%c0, %c0_0] : memref<152x8xf32, #tpu.memory_space<vmem>>, vector<152x8xf32>
    %c0_1 = arith.constant 0 : index
    %c0_2 = arith.constant 0 : index
    %1 = vector.load %arg2[%c0_1, %c0_2] : memref<8x8xf32, #tpu.memory_space<vmem>>, vector<8x8xf32>
    %cst = arith.constant dense<0.000000e+00> : vector<152x8xf32>
    %2 = tpu.matmul %0, %1, %cst {dimension_numbers = #tpu.dot_dimension_numbers<[1], [0], [0], [1], [0, 0, 1, 1], [], []>} : vector<152x8xf32>, vector<8x8xf32>, vector<152x8xf32> -> vector<152x8xf32>
    %c0_3 = arith.constant 0 : index
    %c0_4 = arith.constant 0 : index
    %3 = vector.load %arg3[%c0_3, %c0_4] : memref<1x8xf32, #tpu.memory_space<vmem>>, vector<1x8xf32>
    %4 = vector.broadcast %3 : vector<1x8xf32> to vector<152x8xf32>
    %5 = arith.addf %2, %4 : vector<152x8xf32>
    %cst_5 = arith.constant 0.000000e+00 : f32
    %6 = vector.broadcast %cst_5 : f32 to vector<152x8xf32>
    %7 = arith.maximumf %5, %6 : vector<152x8xf32>
    %cst_6 = arith.constant dense<0.000000e+00> : vector<152xf32>
    %8 = vector.multi_reduction <add>, %7, %cst_6 [1] : vector<152x8xf32> to vector<152xf32>
    %9 = vector.shape_cast %8 : vector<152xf32> to vector<152x1xf32>
    %cst_7 = arith.constant 8.000000e+00 : f32
    %10 = vector.broadcast %cst_7 : f32 to vector<152x1xf32>
    %11 = arith.divf %9, %10 : vector<152x1xf32>
    %12 = vector.broadcast %11 : vector<152x1xf32> to vector<152x8xf32>
    %13 = arith.subf %7, %12 : vector<152x8xf32>
    %14 = arith.mulf %13, %13 : vector<152x8xf32>
    %cst_8 = arith.constant dense<0.000000e+00> : vector<152xf32>
    %15 = vector.multi_reduction <add>, %14, %cst_8 [1] : vector<152x8xf32> to vector<152xf32>
    %16 = vector.shape_cast %15 : vector<152xf32> to vector<152x1xf32>
    %cst_9 = arith.constant 8.000000e+00 : f32
    %17 = vector.broadcast %cst_9 : f32 to vector<152x1xf32>
    %18 = arith.divf %16, %17 : vector<152x1xf32>
    %cst_10 = arith.constant 9.99999974E-6 : f32
    %19 = vector.broadcast %cst_10 : f32 to vector<152x1xf32>
    %20 = arith.addf %18, %19 : vector<152x1xf32>
    %21 = math.rsqrt %20 : vector<152x1xf32>
    %22 = vector.broadcast %21 : vector<152x1xf32> to vector<152x8xf32>
    %23 = arith.mulf %13, %22 : vector<152x8xf32>
    %c0_11 = arith.constant 0 : index
    %c0_12 = arith.constant 0 : index
    %24 = vector.load %arg4[%c0_11, %c0_12] : memref<1x8xf32, #tpu.memory_space<vmem>>, vector<1x8xf32>
    %25 = vector.broadcast %24 : vector<1x8xf32> to vector<152x8xf32>
    %26 = arith.mulf %23, %25 : vector<152x8xf32>
    %c0_13 = arith.constant 0 : index
    %c0_14 = arith.constant 0 : index
    %27 = vector.load %arg5[%c0_13, %c0_14] : memref<1x8xf32, #tpu.memory_space<vmem>>, vector<1x8xf32>
    %28 = vector.broadcast %27 : vector<1x8xf32> to vector<152x8xf32>
    %29 = arith.addf %26, %28 : vector<152x8xf32>
    %cst_15 = arith.constant 0.000000e+00 : f32
    %30 = vector.broadcast %cst_15 : f32 to vector<152x8xf32>
    %31 = arith.maximumf %29, %30 : vector<152x8xf32>
    %c0_16 = arith.constant 0 : index
    %c0_17 = arith.constant 0 : index
    %32 = vector.load %arg6[%c0_16, %c0_17] : memref<152x8xf32, #tpu.memory_space<vmem>>, vector<152x8xf32>
    tpu.vector_store %arg6[%c0_16, %c0_17], %31 {strides = array<i32>} : memref<152x8xf32, #tpu.memory_space<vmem>>, vector<152x8xf32>,
    return
  }
  func.func @transform_0(%arg0: i32) -> (i32, i32) {
    %c0_i32 = arith.constant 0 : i32
    %c0_i32_0 = arith.constant 0 : i32
    return %arg0, %c0_i32 : i32, i32
  }
  func.func @transform_1(%arg0: i32) -> (i32, i32) {
    %c0_i32 = arith.constant 0 : i32
    %c0_i32_0 = arith.constant 0 : i32
    %c0_i32_1 = arith.constant 0 : i32
    return %c0_i32, %c0_i32_0 : i32, i32
  }
  func.func @transform_2(%arg0: i32) -> (i32, i32) {
    %c0_i32 = arith.constant 0 : i32
    %c0_i32_0 = arith.constant 0 : i32
    %c0_i32_1 = arith.constant 0 : i32
    return %c0_i32, %c0_i32_0 : i32, i32
  }
  func.func @transform_3(%arg0: i32) -> (i32, i32) {
    %c0_i32 = arith.constant 0 : i32
    %c0_i32_0 = arith.constant 0 : i32
    %c0_i32_1 = arith.constant 0 : i32
    return %c0_i32, %c0_i32_0 : i32, i32
  }
  func.func @transform_4(%arg0: i32) -> (i32, i32) {
    %c0_i32 = arith.constant 0 : i32
    %c0_i32_0 = arith.constant 0 : i32
    %c0_i32_1 = arith.constant 0 : i32
    return %c0_i32, %c0_i32_0 : i32, i32
  }
  func.func @transform_5(%arg0: i32) -> (i32, i32) {
    %c0_i32 = arith.constant 0 : i32
    %c0_i32_0 = arith.constant 0 : i32
    return %arg0, %c0_i32 : i32, i32
  }
}

</mosaic_0001>

<bundles_post_ra>
// kernel: tpu_custom_call.1
= control target key start
LH: loop header
LB: loop body
LE: loop exit
PB: predicated region body
PF: predicated region fallthrough
CT: control target
= control target key end

     0   :  { %s1086_s18 = smov 0   ;;  %s1571_s0 = inlined_call_operand.vmem [shape: f32[300,8], index: 0, kind: input, shape index: {}]   ;;  %s1572_s1 = inlined_call_operand.vmem [shape: f32[8,8], index: 1, kind: input, shape index: {}]   ;;  %s1573_s2 = inlined_call_operand.vmem [shape: f32[1,8], index: 2, kind: input, shape index: {}]   ;;  %s1574_s3 = inlined_call_operand.vmem [shape: f32[1,8], index: 3, kind: input, shape index: {}]   ;;  %s1575_s4 = inlined_call_operand.vmem [shape: f32[1,8], index: 4, kind: input, shape index: {}]   ;;  %s1576_s5 = inlined_call_operand.vmem [shape: f32[300,8], index: 5, kind: output, shape index: {}]  }
   0x1 LB: > { %s886_s19 = sadd.s32 4294967295, %s1052_s18   ;;  %p890_p0 = scmp.ge.s32.totalorder %s1052_s18, 1  ;;  %s1052_s18 = sphi %s1086_s18, %s15_s18  }
   0x2   : > { %p188_p1 = scmp.lt.s32.totalorder %s1052_s18, 3 }
   0x4   : > { %p189_p2 = pnand %p890_p0, %p188_p1 }
   0x5   : > { %v247_v0 = vld [vmem:[%s1572_s1] sm:$0xff] (!%p189_p2)  ;;  %s216_s22 = smul.u32 (!%p189_p2), 19, %s886_s19  ;;  %v1054_v1 = vmov (!%p189_p2), 0.0   ;;  %vm1055_vm0 = vmmov (!%p189_p2), 0   ;;  %vm255_vm1 = vcmask (!%p189_p2), 64512  }
   0x6   : > { %192 = sbr.rel (%p189_p2) target bundleno = 589 (0x24d), region = 40  ;;  %937 = vmatprep.subr.mxu0 (!%p189_p2), %v1054_v1  ;;  %996 = vmatprep.subr.mxu1 (!%p189_p2), %v1054_v1  ;;  %v1188_v21 = vld [vmem:[%s1573_s2] ss:$0 sm:$0xff] (!%p189_p2) }
   0x7   : > { %938 = vmatpush3.msra.mxu0 (!%p189_p2), %v247_v0  ;;  %997 = vmatpush3.msra.mxu1 (!%p189_p2), %v247_v0  ;;  %p217_p3 = scmp.lt.s32.totalorder (!%p189_p2), %s216_s22, 37 }
   0x8   : > { %939 = vmatprep.mubr.msk.f32.mxu0 (!%p189_p2), %vm1055_vm0, %v1054_v1  ;;  %969 = vmatprep.mubr.msk.f32.mxu1 (!%p189_p2), %vm1055_vm0, %v1054_v1 }
   0xd   : > { %s1578_s22 = smov (!%p217_p3, %s216_s22), 37 }
   0xe   : > { %s891_s23 = sshll.u32 %s1578_s22, 3 }
   0xf   : > { %s1111_s26 = scalar_lea.vmem %s1571_s0, %s891_s23  ;;  %s1475_s10 = scalar_lea.vmem %s1576_s5, %s891_s23 }
  0x10   : > { %v228_v2 = vld [vmem:[%s1111_s26] sm:$0xff]  ;;  %v238_v3 = vld [vmem:[%s1111_s26 + $0x50] sm:$0xff]  ;;  %v229_v4 = vld [vmem:[%s1111_s26 + $0x8] sm:$0xff] }
  0x11   : > { %940 = vmatmul.mubr.msk.f32.vlgmr.msra.gmra.mrb[0].mxu0 %vm255_vm1, %v228_v2  ;;  %970 = vmatmul.mubr.msk.f32.vlgmr.msra.gmra.mrb[0].mxu1 %vm255_vm1, %v238_v3  ;;  %v239_v5 = vld [vmem:[%s1111_s26 + $0x58] sm:$0xff]  ;;  %v230_v6 = vld [vmem:[%s1111_s26 + $0x10] sm:$0xff]  ;;  %v240_v7 = vld [vmem:[%s1111_s26 + $0x60] sm:$0xff] }
  0x12   : > { %942 = vmatprep.mubr.msk.f32.mxu0 %vm1055_vm0, %v1054_v1  ;;  %972 = vmatprep.mubr.msk.f32.mxu1 %vm1055_vm0, %v1054_v1  ;;  %v231_v8 = vld [vmem:[%s1111_s26 + $0x18] sm:$0xff]  ;;  %v241_v9 = vld [vmem:[%s1111_s26 + $0x68] sm:$0xff]  ;;  %v232_v10 = vld [vmem:[%s1111_s26 + $0x20] sm:$0xff] }
  0x13   : > { %v242_v11 = vld [vmem:[%s1111_s26 + $0x70] sm:$0xff]  ;;  %v233_v12 = vld [vmem:[%s1111_s26 + $0x28] sm:$0xff]  ;;  %v243_v13 = vld [vmem:[%s1111_s26 + $0x78] sm:$0xff] }
  0x14   : > { %v234_v14 = vld [vmem:[%s1111_s26 + $0x30] sm:$0xff]  ;;  %v244_v15 = vld [vmem:[%s1111_s26 + $0x80] sm:$0xff]  ;;  %v235_v16 = vld [vmem:[%s1111_s26 + $0x38] sm:$0xff] }
  0x15   : > { %943 = vmatmul.mubr.msk.f32.gmra.mrb[2].mxu0 %vm255_vm1, %v229_v4  ;;  %973 = vmatmul.mubr.msk.f32.gmra.mrb[2].mxu1 %vm255_vm1, %v239_v5  ;;  %v245_v17 = vld [vmem:[%s1111_s26 + $0x88] sm:$0xff]  ;;  %v236_v18 = vld [vmem:[%s1111_s26 + $0x40] sm:$0xff]  ;;  %v246_v19 = vld [vmem:[%s1111_s26 + $0x90] sm:$0xff] }
  0x16   : > { %945 = vmatprep.mubr.msk.f32.mxu0 %vm1055_vm0, %v1054_v1  ;;  %975 = vmatprep.mubr.msk.f32.mxu1 %vm1055_vm0, %v1054_v1  ;;  %v237_v20 = vld [vmem:[%s1111_s26 + $0x48] sm:$0xff] }
  0x19   : > { %946 = vmatmul.mubr.msk.f32.gmra.mrb[4].mxu0 %vm255_vm1, %v230_v6  ;;  %976 = vmatmul.mubr.msk.f32.gmra.mrb[4].mxu1 %vm255_vm1, %v240_v7 }
  0x1a   : > { %948 = vmatprep.mubr.msk.f32.mxu0 %vm1055_vm0, %v1054_v1  ;;  %978 = vmatprep.mubr.msk.f32.mxu1 %vm1055_vm0, %v1054_v1 }
  0x1d   : > { %949 = vmatmul.mubr.msk.f32.gmra.mrb[6].mxu0 %vm255_vm1, %v231_v8  ;;  %979 = vmatmul.mubr.msk.f32.gmra.mrb[6].mxu1 %vm255_vm1, %v241_v9 }
  0x1e   : > { %951 = vmatprep.mubr.msk.f32.mxu0 %vm1055_vm0, %v1054_v1  ;;  %981 = vmatprep.mubr.msk.f32.mxu1 %vm1055_vm0, %v1054_v1 }
  0x21   : > { %952 = vmatmul.mubr.msk.f32.gmra.mrb[8].mxu0 %vm255_vm1, %v232_v10  ;;  %982 = vmatmul.mubr.msk.f32.gmra.mrb[8].mxu1 %vm255_vm1, %v242_v11 }
  0x22   : > { %954 = vmatprep.mubr.msk.f32.mxu0 %vm1055_vm0, %v1054_v1  ;;  %984 = vmatprep.mubr.msk.f32.mxu1 %vm1055_vm0, %v1054_v1 }
  0x25   : > { %955 = vmatmul.mubr.msk.f32.gmra.mrb[10].mxu0 %vm255_vm1, %v233_v12  ;;  %985 = vmatmul.mubr.msk.f32.gmra.mrb[10].mxu1 %vm255_vm1, %v243_v13 }
  0x26   : > { %957 = vmatprep.mubr.msk.f32.mxu0 %vm1055_vm0, %v1054_v1  ;;  %987 = vmatprep.mubr.msk.f32.mxu1 %vm1055_vm0, %v1054_v1 }
  0x29   : > { %958 = vmatmul.mubr.msk.f32.gmra.mrb[12].mxu0 %vm255_vm1, %v234_v14  ;;  %988 = vmatmul.mubr.msk.f32.gmra.mrb[12].mxu1 %vm255_vm1, %v244_v15 }
  0x2a   : > { %960 = vmatprep.mubr.msk.f32.mxu0 %vm1055_vm0, %v1054_v1  ;;  %990 = vmatprep.mubr.msk.f32.mxu1 %vm1055_vm0, %v1054_v1 }
  0x2d   : > { %961 = vmatmul.mubr.msk.f32.gmra.mrb[14].mxu0 %vm255_vm1, %v235_v16  ;;  %991 = vmatmul.mubr.msk.f32.gmra.mrb[14].mxu1 %vm255_vm1, %v245_v17 }
  0x2e   : > { %963 = vmatprep.mubr.msk.f32.mxu0 %vm1055_vm0, %v1054_v1  ;;  %993 = vmatprep.mubr.msk.f32.mxu1 %vm1055_vm0, %v1054_v1 }
  0x31   : > { %964 = vmatmul.mubr.msk.f32.gmra.mrb[16].mxu0 %vm255_vm1, %v236_v18  ;;  %994 = vmatmul.mubr.msk.f32.gmra.mrb[16].mxu1 %vm255_vm1, %v246_v19 }
  0x32   : > { %966 = vmatprep.mubr.msk.f32.mxu0 %vm1055_vm0, %v1054_v1 }
  0x35   : > { %967 = vmatmul.mubr.msk.f32.gmra.mrb[18].mxu0 %vm255_vm1, %v237_v20 }
  0xe4   : > { %v379_v22 = vpop.f32.mrb[0].mxu0  ;;  %v429_v23 = vpop.f32.mrb[0].mxu1 }
  0xe5   : > { %v1191_v24 = vadd.f32 %v1188_v21, %v379_v22  ;;  %v941_v25 = vpop.f32.mrb[1].mxu0  ;;  %v1194_v26 = vadd.f32 %v1188_v21, %v429_v23  ;;  %v971_v27 = vpop.f32.mrb[1].mxu1 }
  0xe7   : > { %v473_v28 = vmax.f32 %v1191_v24, 0.0  ;;  %v483_v29 = vmax.f32 %v1194_v26, 0.0 }
  0xe8   : > { %v384_v30 = vpop.f32.mrb[2].mxu0  ;;  %v434_v31 = vpop.f32.mrb[2].mxu1 }
  0xe9   : > { %v1199_v32 = vadd.f32 %v1188_v21, %v384_v30  ;;  %v1202_v33 = vadd.f32 %v1188_v21, %v434_v31  ;;  %v944_v34 = vpop.f32.mrb[3].mxu0  ;;  %v492_v35 = vsel %vm255_vm1, %v473_v28, 0.0  ;;  %v974_v36 = vpop.f32.mrb[3].mxu1  ;;  %v522_v38 = vsel %vm255_vm1, %v483_v29, 0.0 }
  0xea   : > { %493 = vadd.xlane.f32.xlu0 %v492_v35 }
  0xeb   : > { %v484_v37 = vmax.f32 %v1202_v33, 0.0  ;;  %v474_v41 = vmax.f32 %v1199_v32, 0.0 }
  0xec   : > { %v389_v39 = vpop.f32.mrb[4].mxu0  ;;  %v439_v40 = vpop.f32.mrb[4].mxu1 }
  0xed   : > { %v1213_v42 = vadd.f32 %v1188_v21, %v389_v39  ;;  %v947_v43 = vpop.f32.mrb[5].mxu0  ;;  %v525_v44 = vsel %vm255_vm1, %v484_v37, 0.0  ;;  %v1219_v45 = vadd.f32 %v1188_v21, %v439_v40  ;;  %v977_v46 = vpop.f32.mrb[5].mxu1  ;;  %v495_v53 = vsel %vm255_vm1, %v474_v41, 0.0 }
  0xee   : > { %526 = vadd.xlane.f32.xlu1 %v525_v44  ;;  %523 = vadd.xlane.f32.xlu0 %v522_v38 }
  0xef   : > { %v475_v47 = vmax.f32 %v1213_v42, 0.0  ;;  %v485_v48 = vmax.f32 %v1219_v45, 0.0 }
  0xf0   : > { %v394_v49 = vpop.f32.mrb[6].mxu0  ;;  %v444_v50 = vpop.f32.mrb[6].mxu1 }
  0xf1   : > { %v1224_v51 = vadd.f32 %v1188_v21, %v394_v49  ;;  %v950_v52 = vpop.f32.mrb[7].mxu0  ;;  %v498_v54 = vsel %vm255_vm1, %v475_v47, 0.0  ;;  %v1233_v55 = vadd.f32 %v1188_v21, %v444_v50  ;;  %v980_v56 = vpop.f32.mrb[7].mxu1  ;;  %v528_v59 = vsel %vm255_vm1, %v485_v48, 0.0 }
  0xf2   : > { %496 = vadd.xlane.f32.xlu0 %v495_v53  ;;  %499 = vadd.xlane.f32.xlu1 %v498_v54 }
  0xf3   : > { %v476_v57 = vmax.f32 %v1224_v51, 0.0  ;;  %v486_v58 = vmax.f32 %v1233_v55, 0.0 }
  0xf4   : > { %v399_v60 = vpop.f32.mrb[8].mxu0  ;;  %v449_v61 = vpop.f32.mrb[8].mxu1 }
  0xf5   : > { %v1241_v62 = vadd.f32 %v1188_v21, %v399_v60  ;;  %v953_v63 = vpop.f32.mrb[9].mxu0  ;;  %v501_v0 = vsel %vm255_vm1, %v476_v57, 0.0  ;;  %v1247_v1 = vadd.f32 %v1188_v21, %v449_v61  ;;  %v983_v2 = vpop.f32.mrb[9].mxu1  ;;  %v531_v5 = vsel %vm255_vm1, %v486_v58, 0.0 }
  0xf6   : > { %529 = vadd.xlane.f32.xlu0 %v528_v59  ;;  %502 = vadd.xlane.f32.xlu1 %v501_v0 }
  0xf7   : > { %v477_v3 = vmax.f32 %v1241_v62, 0.0  ;;  %v487_v4 = vmax.f32 %v1247_v1, 0.0 }
  0xf8   : > { %v404_v6 = vpop.f32.mrb[10].mxu0  ;;  %v454_v7 = vpop.f32.mrb[10].mxu1 }
  0xf9   : > { %v1255_v8 = vadd.f32 %v1188_v21, %v404_v6  ;;  %v956_v9 = vpop.f32.mrb[11].mxu0  ;;  %v504_v10 = vsel %vm255_vm1, %v477_v3, 0.0  ;;  %v1261_v11 = vadd.f32 %v1188_v21, %v454_v7  ;;  %v986_v12 = vpop.f32.mrb[11].mxu1  ;;  %v534_v15 = vsel %vm255_vm1, %v487_v4, 0.0 }
  0xfa   : > { %532 = vadd.xlane.f32.xlu1 %v531_v5  ;;  %505 = vadd.xlane.f32.xlu0 %v504_v10 }
  0xfb   : > { %v478_v13 = vmax.f32 %v1255_v8, 0.0  ;;  %v488_v14 = vmax.f32 %v1261_v11, 0.0 }
  0xfc   : > { %v409_v16 = vpop.f32.mrb[12].mxu0  ;;  %v459_v17 = vpop.f32.mrb[12].mxu1 }
  0xfd   : > { %v1269_v18 = vadd.f32 %v1188_v21, %v409_v16  ;;  %v959_v19 = vpop.f32.mrb[13].mxu0  ;;  %v507_v20 = vsel %vm255_vm1, %v478_v13, 0.0  ;;  %v1275_v22 = vadd.f32 %v1188_v21, %v459_v17  ;;  %v989_v23 = vpop.f32.mrb[13].mxu1  ;;  %v537_v30 = vsel %vm255_vm1, %v488_v14, 0.0 }
  0xfe   : > { %535 = vadd.xlane.f32.xlu0 %v534_v15  ;;  %508 = vadd.xlane.f32.xlu1 %v507_v20 }
  0xff   : > { %v479_v25 = vmax.f32 %v1269_v18, 0.0  ;;  %v489_v27 = vmax.f32 %v1275_v22, 0.0 }
 0x100   : > { %v414_v31 = vpop.f32.mrb[14].mxu0  ;;  %v464_v34 = vpop.f32.mrb[14].mxu1 }
 0x101   : > { %v1283_v35 = vadd.f32 %v1188_v21, %v414_v31  ;;  %v962_v36 = vpop.f32.mrb[15].mxu0  ;;  %v510_v38 = vsel %vm255_vm1, %v479_v25, 0.0  ;;  %v992_v39 = vpop.f32.mrb[15].mxu1  ;;  %v540_v43 = vsel %vm255_vm1, %v489_v27, 0.0  ;;  %v1304_v61 = vadd.f32 %v1188_v21, %v464_v34 }
 0x102   : > { %538 = vadd.xlane.f32.xlu1 %v537_v30  ;;  %511 = vadd.xlane.f32.xlu0 %v510_v38 }
 0x103   : > { %v480_v40 = vmax.f32 %v1283_v35, 0.0  ;;  %v490_v7 = vmax.f32 %v1304_v61, 0.0 }
 0x104   : > { %v419_v44 = vpop.f32.mrb[16].mxu0  ;;  %v469_v46 = vpop.f32.mrb[16].mxu1 }
 0x105   : > { %v1293_v49 = vadd.f32 %v1188_v21, %v419_v44  ;;  %v965_v50 = vpop.f32.mrb[17].mxu0  ;;  %v513_v52 = vsel %vm255_vm1, %v480_v40, 0.0  ;;  %v1299_v53 = vadd.f32 %v1188_v21, %v469_v46  ;;  %v995_v54 = vpop.f32.mrb[17].mxu1 }
 0x106   : > { %541 = vadd.xlane.f32.xlu0 %v540_v43  ;;  %514 = vadd.xlane.f32.xlu1 %v513_v52 }
 0x107   : > { %v481_v56 = vmax.f32 %v1293_v49, 0.0  ;;  %v491_v59 = vmax.f32 %v1299_v53, 0.0 }
 0x108   : > { %v424_v60 = vpop.f32.mrb[18].mxu0 }
 0x109   : > { %v1307_v63 = vadd.f32 %v1188_v21, %v424_v60  ;;  %v968_v0 = vpop.f32.mrb[19].mxu0  ;;  %v516_v2 = vsel %vm255_vm1, %v481_v56, 0.0  ;;  %v546_v6 = vsel %vm255_vm1, %v491_v59, 0.0  ;;  %v543_v21 = vsel %vm255_vm1, %v490_v7, 0.0 }
 0x10a   : > { %517 = vadd.xlane.f32.xlu0 %v516_v2 }
 0x10b   : > { %v482_v5 = vmax.f32 %v1307_v63, 0.0 }
 0x10d   : > { %v519_v9 = vsel %vm255_vm1, %v482_v5, 0.0 }
 0x10e   : > { %547 = vadd.xlane.f32.xlu0 %v546_v6  ;;  %520 = vadd.xlane.f32.xlu1 %v519_v9 }
 0x112   : > { %544 = vadd.xlane.f32.xlu1 %v543_v21 }
 0x177   : > { %v494_v10 = vpop.xlane.xlu0 %493 }
 0x178   : > { %v550_v12 = vmul.f32 0.125, %v494_v10 }
 0x17a   : > { %v1325_v15 = vsub.f32 %v473_v28, %v550_v12 }
 0x17b   : > { %v527_v16 = vpop.xlane.xlu1 %526  ;;  %v524_v17 = vpop.xlane.xlu0 %523 }
 0x17c   : > { %v560_v19 = vmul.f32 0.125, %v524_v17  ;;  %v588_v20 = vmul.f32 %v1325_v15, %v1325_v15  ;;  %v561_v23 = vmul.f32 0.125, %v527_v16 }
 0x17e   : > { %v1331_v30 = vsub.f32 %v483_v29, %v560_v19  ;;  %v607_v31 = vsel %vm255_vm1, %v588_v20, 0.0  ;;  %v1338_v39 = vsub.f32 %v484_v37, %v561_v23 }
 0x17f   : > { %v497_v34 = vpop.xlane.xlu0 %496  ;;  %v500_v36 = vpop.xlane.xlu1 %499  ;;  %608 = vadd.xlane.f32.xlu1 %v607_v31 }
 0x180   : > { %v551_v38 = vmul.f32 0.125, %v497_v34  ;;  %v552_v24 = vmul.f32 0.125, %v500_v36  ;;  %v598_v28 = vmul.f32 %v1331_v30, %v1331_v30  ;;  %v599_v32 = vmul.f32 %v1338_v39, %v1338_v39 }
 0x182   : > { %v1342_v43 = vsub.f32 %v474_v41, %v551_v38  ;;  %v1346_v26 = vsub.f32 %v475_v47, %v552_v24  ;;  %v637_v29 = vsel %vm255_vm1, %v598_v28, 0.0 }
 0x183   : > { %v530_v44 = vpop.xlane.xlu0 %529  ;;  %v503_v46 = vpop.xlane.xlu1 %502  ;;  %638 = vadd.xlane.f32.xlu1 %v637_v29 }
 0x184   : > { %v562_v50 = vmul.f32 0.125, %v530_v44  ;;  %v553_v52 = vmul.f32 0.125, %v503_v46  ;;  %v589_v33 = vmul.f32 %v1342_v43, %v1342_v43  ;;  %v590_v37 = vmul.f32 %v1346_v26, %v1346_v26 }
 0x186   : > { %v1357_v41 = vsub.f32 %v485_v48, %v562_v50  ;;  %v1361_v42 = vsub.f32 %v476_v57, %v553_v52  ;;  %v610_v47 = vsel %vm255_vm1, %v589_v33, 0.0  ;;  %v613_v54 = vsel %vm255_vm1, %v590_v37, 0.0 }
 0x187   : > { %v533_v60 = vpop.xlane.xlu1 %532  ;;  %v506_v0 = vpop.xlane.xlu0 %505  ;;  %611 = vadd.xlane.f32.xlu0 %v610_v47  ;;  %614 = vadd.xlane.f32.xlu1 %v613_v54  ;;  %v640_v57 = vsel %vm255_vm1, %v599_v32, 0.0 }
 0x188   : > { %v563_v2 = vmul.f32 0.125, %v533_v60  ;;  %v554_v6 = vmul.f32 0.125, %v506_v0  ;;  %v600_v9 = vmul.f32 %v1357_v41, %v1357_v41  ;;  %v591_v45 = vmul.f32 %v1361_v42, %v1361_v42 }
 0x18a   : > { %v1371_v48 = vsub.f32 %v486_v58, %v563_v2  ;;  %v1375_v51 = vsub.f32 %v477_v3, %v554_v6  ;;  %v643_v21 = vsel %vm255_vm1, %v600_v9, 0.0  ;;  %v616_v55 = vsel %vm255_vm1, %v591_v45, 0.0 }
 0x18b   : > { %v536_v10 = vpop.xlane.xlu0 %535  ;;  %v509_v12 = vpop.xlane.xlu1 %508  ;;  %641 = vadd.xlane.f32.xlu0 %v640_v57  ;;  %644 = vadd.xlane.f32.xlu1 %v643_v21 }
 0x18c   : > { %v564_v16 = vmul.f32 0.125, %v536_v10  ;;  %v555_v17 = vmul.f32 0.125, %v509_v12  ;;  %v592_v19 = vmul.f32 %v1375_v51, %v1375_v51  ;;  %v601_v20 = vmul.f32 %v1371_v48, %v1371_v48 }
 0x18e   : > { %v1384_v58 = vsub.f32 %v487_v4, %v564_v16  ;;  %v1388_v62 = vsub.f32 %v478_v13, %v555_v17  ;;  %v619_v3 = vsel %vm255_vm1, %v592_v19, 0.0  ;;  %v646_v38 = vsel %vm255_vm1, %v601_v20, 0.0 }
 0x18f   : > { %v539_v23 = vpop.xlane.xlu1 %538  ;;  %v512_v31 = vpop.xlane.xlu0 %511  ;;  %617 = vadd.xlane.f32.xlu0 %v616_v55  ;;  %620 = vadd.xlane.f32.xlu1 %v619_v3 }
 0x190   : > { %v565_v34 = vmul.f32 0.125, %v539_v23  ;;  %v556_v36 = vmul.f32 0.125, %v512_v31  ;;  %v602_v1 = vmul.f32 %v1384_v58, %v1384_v58  ;;  %v593_v4 = vmul.f32 %v1388_v62, %v1388_v62 }
 0x192   : > { %v1399_v8 = vsub.f32 %v488_v14, %v565_v34  ;;  %v1403_v13 = vsub.f32 %v479_v25, %v556_v36  ;;  %v649_v24 = vsel %vm255_vm1, %v602_v1, 0.0  ;;  %v622_v11 = vsel %vm255_vm1, %v593_v4, 0.0 }
 0x193   : > { %v542_v28 = vpop.xlane.xlu0 %541  ;;  %v515_v29 = vpop.xlane.xlu1 %514  ;;  %647 = vadd.xlane.f32.xlu0 %v646_v38  ;;  %650 = vadd.xlane.f32.xlu1 %v649_v24 }
 0x194   : > { %v566_v44 = vmul.f32 0.125, %v542_v28  ;;  %v557_v46 = vmul.f32 0.125, %v515_v29  ;;  %v594_v50 = vmul.f32 %v1403_v13, %v1403_v13  ;;  %v603_v52 = vmul.f32 %v1399_v8, %v1399_v8  ;;  %v1459_v29 = vld [vmem:[%s1574_s3] ss:$0 sm:$0xff] }
 0x196   : > { %v1412_v14 = vsub.f32 %v489_v27, %v566_v44  ;;  %v1416_v18 = vsub.f32 %v480_v40, %v557_v46  ;;  %v625_v25 = vsel %vm255_vm1, %v594_v50, 0.0  ;;  %v652_v27 = vsel %vm255_vm1, %v603_v52, 0.0  ;;  %v1465_v52 = vld [vmem:[%s1575_s4] ss:$0 sm:$0xff] }
 0x197   : > { %623 = vadd.xlane.f32.xlu0 %v622_v11  ;;  %v518_v33 = vpop.xlane.xlu0 %517  ;;  %626 = vadd.xlane.f32.xlu1 %v625_v25 }
 0x198   : > { %v558_v37 = vmul.f32 0.125, %v518_v33  ;;  %v604_v32 = vmul.f32 %v1412_v14, %v1412_v14  ;;  %v595_v40 = vmul.f32 %v1416_v18, %v1416_v18 }
 0x19a   : > { %v1425_v22 = vsub.f32 %v481_v56, %v558_v37  ;;  %v655_v35 = vsel %vm255_vm1, %v604_v32, 0.0  ;;  %v628_v6 = vsel %vm255_vm1, %v595_v40, 0.0 }
 0x19b   : > { %653 = vadd.xlane.f32.xlu0 %v652_v27  ;;  %v548_v47 = vpop.xlane.xlu0 %547  ;;  %656 = vadd.xlane.f32.xlu1 %v655_v35  ;;  %v521_v54 = vpop.xlane.xlu1 %520 }
 0x19c   : > { %v568_v60 = vmul.f32 0.125, %v548_v47  ;;  %v559_v0 = vmul.f32 0.125, %v521_v54  ;;  %v596_v2 = vmul.f32 %v1425_v22, %v1425_v22 }
 0x19e   : > { %v1435_v49 = vsub.f32 %v491_v59, %v568_v60  ;;  %v1439_v56 = vsub.f32 %v482_v5, %v559_v0  ;;  %v631_v9 = vsel %vm255_vm1, %v596_v2, 0.0 }
 0x19f   : > { %629 = vadd.xlane.f32.xlu0 %v628_v6  ;;  %632 = vadd.xlane.f32.xlu1 %v631_v9  ;;  %v545_v45 = vpop.xlane.xlu1 %544 }
 0x1a0   : > { %v567_v57 = vmul.f32 0.125, %v545_v45  ;;  %v606_v21 = vmul.f32 %v1435_v49, %v1435_v49  ;;  %v597_v53 = vmul.f32 %v1439_v56, %v1439_v56 }
 0x1a2   : > { %v1449_v59 = vsub.f32 %v490_v7, %v567_v57  ;;  %v661_v63 = vsel %vm255_vm1, %v606_v21, 0.0  ;;  %v634_v5 = vsel %vm255_vm1, %v597_v53, 0.0 }
 0x1a3   : > { %662 = vadd.xlane.f32.xlu1 %v661_v63  ;;  %635 = vadd.xlane.f32.xlu0 %v634_v5 }
 0x1a4   : > { %v605_v10 = vmul.f32 %v1449_v59, %v1449_v59 }
 0x1a6   : > { %v658_v12 = vsel %vm255_vm1, %v605_v10, 0.0 }
 0x1a7   : > { %659 = vadd.xlane.f32.xlu0 %v658_v12 }
 0x20c   : > { %v609_v16 = vpop.xlane.xlu1 %608 }
 0x20d   : > { %v664_v17 = vmul.f32 0.125, %v609_v16 }
 0x20f   : > { %v683_v19 = vadd.f32 1e-05, %v664_v17 }
 0x210   : > { %v639_v55 = vpop.xlane.xlu1 %638 }
 0x211   : > { %1008 = vrsqrt.f32 %v683_v19  ;;  %v674_v61 = vmul.f32 0.125, %v639_v55 }
 0x213   : > { %v693_v7 = vadd.f32 1e-05, %v674_v61 }
 0x214   : > { %v612_v3 = vpop.xlane.xlu0 %611  ;;  %v615_v20 = vpop.xlane.xlu1 %614 }
 0x215   : > { %1010 = vrsqrt.f32 %v693_v7  ;;  %v665_v23 = vmul.f32 0.125, %v612_v3  ;;  %v666_v31 = vmul.f32 0.125, %v615_v20 }
 0x217   : > { %v684_v34 = vadd.f32 1e-05, %v665_v23  ;;  %v685_v36 = vadd.f32 1e-05, %v666_v31 }
 0x218   : > { %v642_v1 = vpop.xlane.xlu0 %641  ;;  %v645_v4 = vpop.xlane.xlu1 %644 }
 0x219   : > { %1012 = vrsqrt.f32 %v684_v34  ;;  %v675_v38 = vmul.f32 0.125, %v642_v1  ;;  %v676_v24 = vmul.f32 0.125, %v645_v4 }
 0x21a   : > { %1014 = vrsqrt.f32 %v685_v36 }
 0x21b   : > { %v1009_v28 = vpop.eup %1008  ;;  %v694_v44 = vadd.f32 1e-05, %v675_v38  ;;  %v695_v46 = vadd.f32 1e-05, %v676_v24 }
 0x21c   : > { %v721_v50 = vmul.f32 %v1009_v28, %v1325_v15  ;;  %v618_v11 = vpop.xlane.xlu0 %617  ;;  %v621_v25 = vpop.xlane.xlu1 %620 }
 0x21d   : > { %1016 = vrsqrt.f32 %v694_v44  ;;  %v667_v33 = vmul.f32 0.125, %v618_v11  ;;  %v668_v37 = vmul.f32 0.125, %v621_v25 }
 0x21e   : > { %v747_v32 = vmul.f32 %v1459_v29, %v721_v50  ;;  %1018 = vrsqrt.f32 %v695_v46 }
 0x21f   : > { %v1011_v27 = vpop.eup %1010  ;;  %v686_v35 = vadd.f32 1e-05, %v667_v33  ;;  %v687_v40 = vadd.f32 1e-05, %v668_v37 }
 0x220   : > { %v773_v47 = vadd.f32 %v1465_v52, %v747_v32  ;;  %v731_v15 = vmul.f32 %v1011_v27, %v1331_v30  ;;  %v648_v54 = vpop.xlane.xlu0 %647  ;;  %v651_v60 = vpop.xlane.xlu1 %650 }
 0x221   : > { %1020 = vrsqrt.f32 %v686_v35  ;;  %v677_v0 = vmul.f32 0.125, %v648_v54  ;;  %v678_v2 = vmul.f32 0.125, %v651_v60 }
 0x222   : > { %v792_v6 = vmax.f32 %v773_v47, 0.0  ;;  %v757_v9 = vmul.f32 %v1459_v29, %v731_v15  ;;  %1022 = vrsqrt.f32 %v687_v40 }
 0x223   : > { %v1013_v45 = vpop.eup %1012  ;;  %v696_v57 = vadd.f32 1e-05, %v677_v0  ;;  %v697_v21 = vadd.f32 1e-05, %v678_v2 }
 0x224   : > { %v1015_v30 = vpop.eup %1014  ;;  %811 = vst.msk [vmem:[%s1475_s10] sm:$0xff] %vm255_vm1, %v792_v6  ;;  %v783_v53 = vadd.f32 %v1465_v52, %v757_v9  ;;  %v722_v63 = vmul.f32 %v1013_v45, %v1342_v43  ;;  %v624_v5 = vpop.xlane.xlu0 %623 }
 0x225   : > { %v627_v10 = vpop.xlane.xlu1 %626  ;;  %v723_v12 = vmul.f32 %v1015_v30, %v1346_v26  ;;  %1024 = vrsqrt.f32 %v696_v57  ;;  %v669_v16 = vmul.f32 0.125, %v624_v5 }
 0x226   : > { %v670_v17 = vmul.f32 0.125, %v627_v10  ;;  %v802_v19 = vmax.f32 %v783_v53, 0.0  ;;  %v748_v55 = vmul.f32 %v1459_v29, %v722_v63  ;;  %1026 = vrsqrt.f32 %v697_v21 }
 0x227   : > { %v1017_v61 = vpop.eup %1016  ;;  %v749_v7 = vmul.f32 %v1459_v29, %v723_v12  ;;  %v688_v3 = vadd.f32 1e-05, %v669_v16 }
 0x228   : > { %v689_v20 = vadd.f32 1e-05, %v670_v17  ;;  %v1019_v23 = vpop.eup %1018  ;;  %821 = vst.msk [vmem:[%s1475_s10 + $0x50] sm:$0xff] %vm255_vm1, %v802_v19  ;;  %v774_v43 = vadd.f32 %v1465_v52, %v748_v55  ;;  %v732_v31 = vmul.f32 %v1017_v61, %v1338_v39  ;;  %v654_v26 = vpop.xlane.xlu0 %653 }
 0x229   : > { %v657_v34 = vpop.xlane.xlu1 %656  ;;  %v775_v36 = vadd.f32 %v1465_v52, %v749_v7  ;;  %v733_v1 = vmul.f32 %v1019_v23, %v1357_v41  ;;  %1028 = vrsqrt.f32 %v688_v3  ;;  %v679_v4 = vmul.f32 0.125, %v654_v26 }
 0x22a   : > { %v793_v38 = vmax.f32 %v774_v43, 0.0  ;;  %v758_v24 = vmul.f32 %v1459_v29, %v732_v31  ;;  %1030 = vrsqrt.f32 %v689_v20  ;;  %v680_v28 = vmul.f32 0.125, %v657_v34 }
 0x22b   : > { %v1021_v44 = vpop.eup %1020  ;;  %v794_v46 = vmax.f32 %v775_v36, 0.0  ;;  %v759_v50 = vmul.f32 %v1459_v29, %v733_v1  ;;  %v698_v39 = vadd.f32 1e-05, %v679_v4 }
 0x22c   : > { %v1023_v11 = vpop.eup %1022  ;;  %812 = vst.msk [vmem:[%s1475_s10 + $0x8] sm:$0xff] %vm255_vm1, %v793_v38  ;;  %v784_v25 = vadd.f32 %v1465_v52, %v758_v24  ;;  %v724_v41 = vmul.f32 %v1021_v44, %v1361_v42  ;;  %v699_v33 = vadd.f32 1e-05, %v680_v28  ;;  %v630_v37 = vpop.xlane.xlu0 %629 }
 0x22d   : > { %v633_v32 = vpop.xlane.xlu1 %632  ;;  %813 = vst.msk [vmem:[%s1475_s10 + $0x10] sm:$0xff] %vm255_vm1, %v794_v46  ;;  %v785_v27 = vadd.f32 %v1465_v52, %v759_v50  ;;  %v725_v35 = vmul.f32 %v1023_v11, %v1375_v51  ;;  %1032 = vrsqrt.f32 %v698_v39  ;;  %v671_v40 = vmul.f32 0.125, %v630_v37 }
 0x22e   : > { %v803_v47 = vmax.f32 %v784_v25, 0.0  ;;  %v750_v15 = vmul.f32 %v1459_v29, %v724_v41  ;;  %1034 = vrsqrt.f32 %v699_v33  ;;  %v672_v54 = vmul.f32 0.125, %v633_v32 }
 0x22f   : > { %v1025_v60 = vpop.eup %1024  ;;  %v804_v42 = vmax.f32 %v785_v27, 0.0  ;;  %v751_v0 = vmul.f32 %v1459_v29, %v725_v35  ;;  %v690_v2 = vadd.f32 1e-05, %v671_v40 }
 0x230   : > { %v1027_v6 = vpop.eup %1026  ;;  %822 = vst.msk [vmem:[%s1475_s10 + $0x58] sm:$0xff] %vm255_vm1, %v803_v47  ;;  %v776_v9 = vadd.f32 %v1465_v52, %v750_v15  ;;  %v734_v51 = vmul.f32 %v1025_v60, %v1371_v48  ;;  %v691_v45 = vadd.f32 1e-05, %v672_v54  ;;  %v636_v57 = vpop.xlane.xlu0 %635 }
 0x231   : > { %v663_v21 = vpop.xlane.xlu1 %662  ;;  %823 = vst.msk [vmem:[%s1475_s10 + $0x60] sm:$0xff] %vm255_vm1, %v804_v42  ;;  %v777_v30 = vadd.f32 %v1465_v52, %v751_v0  ;;  %v735_v53 = vmul.f32 %v1027_v6, %v1384_v58  ;;  %1036 = vrsqrt.f32 %v690_v2  ;;  %v673_v63 = vmul.f32 0.125, %v636_v57 }
 0x232   : > { %v795_v5 = vmax.f32 %v776_v9, 0.0  ;;  %v760_v10 = vmul.f32 %v1459_v29, %v734_v51  ;;  %1038 = vrsqrt.f32 %v691_v45  ;;  %v682_v12 = vmul.f32 0.125, %v663_v21 }
 0x233   : > { %v1029_v16 = vpop.eup %1028  ;;  %v796_v48 = vmax.f32 %v777_v30, 0.0  ;;  %v761_v17 = vmul.f32 %v1459_v29, %v735_v53  ;;  %v692_v19 = vadd.f32 1e-05, %v673_v63 }
 0x234   : > { %v1031_v55 = vpop.eup %1030  ;;  %814 = vst.msk [vmem:[%s1475_s10 + $0x18] sm:$0xff] %vm255_vm1, %v795_v5  ;;  %v786_v61 = vadd.f32 %v1465_v52, %v760_v10  ;;  %v726_v58 = vmul.f32 %v1029_v16, %v1388_v62  ;;  %v701_v7 = vadd.f32 1e-05, %v682_v12  ;;  %v660_v3 = vpop.xlane.xlu0 %659 }
 0x235   : > { %815 = vst.msk [vmem:[%s1475_s10 + $0x20] sm:$0xff] %vm255_vm1, %v796_v48  ;;  %v787_v20 = vadd.f32 %v1465_v52, %v761_v17  ;;  %v727_v23 = vmul.f32 %v1031_v55, %v1403_v13  ;;  %1040 = vrsqrt.f32 %v692_v19  ;;  %v681_v43 = vmul.f32 0.125, %v660_v3 }
 0x236   : > { %v805_v31 = vmax.f32 %v786_v61, 0.0  ;;  %v752_v26 = vmul.f32 %v1459_v29, %v726_v58  ;;  %1042 = vrsqrt.f32 %v701_v7 }
 0x237   : > { %v1033_v34 = vpop.eup %1032  ;;  %v806_v36 = vmax.f32 %v787_v20, 0.0  ;;  %v753_v62 = vmul.f32 %v1459_v29, %v727_v23  ;;  %v700_v1 = vadd.f32 1e-05, %v681_v43 }
 0x238   : > { %v1035_v4 = vpop.eup %1034  ;;  %824 = vst.msk [vmem:[%s1475_s10 + $0x68] sm:$0xff] %vm255_vm1, %v805_v31  ;;  %v778_v38 = vadd.f32 %v1465_v52, %v752_v26  ;;  %v736_v13 = vmul.f32 %v1033_v34, %v1399_v8 }
 0x239   : > { %825 = vst.msk [vmem:[%s1475_s10 + $0x70] sm:$0xff] %vm255_vm1, %v806_v36  ;;  %v779_v24 = vadd.f32 %v1465_v52, %v753_v62  ;;  %v737_v28 = vmul.f32 %v1035_v4, %v1412_v14  ;;  %1044 = vrsqrt.f32 %v700_v1 }
 0x23a   : > { %v797_v44 = vmax.f32 %v778_v38, 0.0  ;;  %v762_v46 = vmul.f32 %v1459_v29, %v736_v13 }
 0x23b   : > { %v1037_v50 = vpop.eup %1036  ;;  %v798_v39 = vmax.f32 %v779_v24, 0.0  ;;  %v763_v11 = vmul.f32 %v1459_v29, %v737_v28 }
 0x23c   : > { %v1039_v25 = vpop.eup %1038  ;;  %816 = vst.msk [vmem:[%s1475_s10 + $0x28] sm:$0xff] %vm255_vm1, %v797_v44  ;;  %v788_v8 = vadd.f32 %v1465_v52, %v762_v46  ;;  %v728_v41 = vmul.f32 %v1037_v50, %v1416_v18 }
 0x23d   : > { %817 = vst.msk [vmem:[%s1475_s10 + $0x30] sm:$0xff] %vm255_vm1, %v798_v39  ;;  %v789_v14 = vadd.f32 %v1465_v52, %v763_v11  ;;  %v729_v33 = vmul.f32 %v1039_v25, %v1425_v22 }
 0x23e   : > { %v807_v37 = vmax.f32 %v788_v8, 0.0  ;;  %v754_v32 = vmul.f32 %v1459_v29, %v728_v41 }
 0x23f   : > { %v1041_v27 = vpop.eup %1040  ;;  %v808_v35 = vmax.f32 %v789_v14, 0.0  ;;  %v755_v40 = vmul.f32 %v1459_v29, %v729_v33 }
 0x240   : > { %v1043_v47 = vpop.eup %1042  ;;  %826 = vst.msk [vmem:[%s1475_s10 + $0x78] sm:$0xff] %vm255_vm1, %v807_v37  ;;  %v780_v18 = vadd.f32 %v1465_v52, %v754_v32  ;;  %v730_v15 = vmul.f32 %v1041_v27, %v1439_v56 }
 0x241   : > { %827 = vst.msk [vmem:[%s1475_s10 + $0x80] sm:$0xff] %vm255_vm1, %v808_v35  ;;  %v781_v22 = vadd.f32 %v1465_v52, %v755_v40  ;;  %v739_v54 = vmul.f32 %v1043_v47, %v1435_v49 }
 0x242   : > { %v799_v60 = vmax.f32 %v780_v18, 0.0  ;;  %v756_v42 = vmul.f32 %v1459_v29, %v730_v15 }
 0x243   : > { %v1045_v0 = vpop.eup %1044  ;;  %v800_v2 = vmax.f32 %v781_v22, 0.0  ;;  %v765_v6 = vmul.f32 %v1459_v29, %v739_v54 }
 0x244   : > { %818 = vst.msk [vmem:[%s1475_s10 + $0x38] sm:$0xff] %vm255_vm1, %v799_v60  ;;  %v782_v56 = vadd.f32 %v1465_v52, %v756_v42  ;;  %v738_v9 = vmul.f32 %v1045_v0, %v1449_v59 }
 0x245   : > { %819 = vst.msk [vmem:[%s1475_s10 + $0x40] sm:$0xff] %vm255_vm1, %v800_v2  ;;  %v791_v51 = vadd.f32 %v1465_v52, %v765_v6 }
 0x246   : > { %v801_v49 = vmax.f32 %v782_v56, 0.0  ;;  %v764_v45 = vmul.f32 %v1459_v29, %v738_v9 }
 0x247   : > { %v810_v57 = vmax.f32 %v791_v51, 0.0 }
 0x248   : > { %820 = vst.msk [vmem:[%s1475_s10 + $0x48] sm:$0xff] %vm255_vm1, %v801_v49  ;;  %v790_v21 = vadd.f32 %v1465_v52, %v764_v45 }
 0x249   : > { %829 = vst.msk [vmem:[%s1475_s10 + $0x90] sm:$0xff] %vm255_vm1, %v810_v57 }
 0x24a   : > { %v809_v30 = vmax.f32 %v790_v21, 0.0 }
 0x24c   : > { %828 = vst.msk [vmem:[%s1475_s10 + $0x88] sm:$0xff] %vm255_vm1, %v809_v30 }
 0x24d PF: > { %s15_s18 = sadd.s32 1, %s1052_s18  }
 0x24e   : > { %p12_p4 = scmp.ge.s32.totalorder %s15_s18, 4  }
 0x250   :  { %14 = sbr.rel (!%p12_p4) target bundleno = 1 (0x1), region = 70 }

</bundles_post_ra>
